<compile_context>
chip_gen: v7x
topology: tpu7x:2x2x1
jax: 0.10.0
libtpu: 0.0.40
codegen_flags: <defaults>
</compile_context>

<pallas_src>
import jax
import jax.numpy as jnp
from jax.experimental import pallas as pl
from jax.experimental.pallas import tpu as pltpu


def _ru(x, m):
    return ((int(x) + m - 1) // m) * m


def _tile_bytes(rows, cols, itemsize):
    # VMEM footprint of a 2-D tile after (8, 128) tiling/padding.
    return _ru(max(int(rows), 1), 8) * _ru(max(int(cols), 1), 128) * itemsize


def attentive_pooling_kernel(x_ref, w1_ref, b1_ref, w2_ref, eb_ref, w3_ref, b3_ref,
                             out_ref):
    # x_ref: (TB, N*C) — neighbors packed along the lane dimension.
    xf = x_ref[...]

    # score_fn layer 1: per-neighbor Linear(C, C//2) + ReLU as ONE dense-K matmul
    # against the block-diagonal kron(I_N, w1) weight.
    h = jnp.dot(xf, w1_ref[...], preferred_element_type=jnp.float32) + b1_ref[...]
    h = jnp.maximum(h, 0.0)                                   # (TB, N*C//2), f32

    # score_fn layer 2: per-neighbor Linear(C//2, 1) via block-diag columns of w2.
    # (b2 omitted: a uniform shift before the softmax over N is exactly a no-op.)
    s = jnp.dot(h.astype(w2_ref.dtype), w2_ref[...],
                preferred_element_type=jnp.float32)           # (TB, N), 2-D scores

    # softmax over the neighbor axis (PyTorch dim=1) — lane reduce, EXACT division.
    m = jnp.max(s, axis=-1, keepdims=True)
    e = jnp.exp(s - m)
    a = e / jnp.sum(e, axis=-1, keepdims=True)                # (TB, N), f32

    # Broadcast each neighbor weight across its C lanes (one-hot expansion matmul:
    # guaranteed lowering, no lane relayout).
    a_b = jnp.dot(a, eb_ref[...], preferred_element_type=jnp.float32)  # (TB, N*C)

    # Weighted neighbor sum + output Linear folded into one dense-K matmul:
    #   sum_n a_n * (x_n @ w3)  ==  (a_bcast ⊙ x_flat) @ vstack([w3]*N)
    z = (xf.astype(jnp.float32) * a_b).astype(w3_ref.dtype)
    out = jnp.dot(z, w3_ref[...], preferred_element_type=jnp.float32) + b3_ref[...]
    out_ref[...] = jnp.maximum(out, 0.0).astype(out_ref.dtype)


def _prep_weights(w1, b1, w2, w3, b3, N, mm_dtype):
    C, C_half = w1.shape
    C_out = w3.shape[-1]
    eye = jnp.eye(N, dtype=jnp.float32)
    w1bd = jnp.kron(eye, w1.astype(jnp.float32)).astype(mm_dtype)          # (N*C, N*C//2)
    w2bd = jnp.kron(eye, w2.astype(jnp.float32).reshape(C_half, 1)).astype(mm_dtype)
    ebc = jnp.kron(eye, jnp.ones((1, C), jnp.float32))                     # (N, N*C), f32
    w3st = jnp.tile(w3.astype(mm_dtype), (N, 1))                           # (N*C, C_out)
    b1f = jnp.tile(b1.reshape(1, C_half).astype(jnp.float32), (1, N))      # (1, N*C//2)
    b3f = b3.reshape(1, C_out).astype(jnp.float32)                         # (1, C_out)
    return w1bd, b1f, w2bd, ebc, w3st, b3f


def attentive_pooling(x, w1, b1, w2, b2, w3, b3, *, block_b=None, mm_dtype=None):
    """x: (B, N, C).  Weights laid out as (in, out); biases as (1, out).

    b2 is accepted for API parity but unused (shift-invariant under softmax over N).
    Matmuls run in `mm_dtype` (default: x.dtype) with f32 accumulation — pass bf16
    activations for bf16 MXU passes and halved HBM read on v6e/v7x.
    """
    del b2
    B, N, C = x.shape
    C_half = w1.shape[1]
    C_out = w3.shape[1]
    if mm_dtype is None:
        mm_dtype = x.dtype
    it_mm = jnp.dtype(mm_dtype).itemsize

    # TODO(synk): for very wide channels (C >~ 256) the kron(I_N, w1) block-diag weight
    # gets too large; use a grouped P<N packing (or the unpacked layout) instead.
    if (N * C) * (N * C_half) * it_mm > (16 << 20):
        raise ValueError("AttentivePooling Pallas kernel: channel width too large for "
                         "the full-N block-diagonal packing; use a grouped variant.")

    # Lane-dense packed view of x (free row-major reshape) and packed weights.
    x_flat = x.reshape(B, N * C).astype(mm_dtype)
    w1bd, b1f, w2bd, ebc, w3st, b3f = _prep_weights(w1, b1, w2, w3, b3, N, mm_dtype)

    NC, NH = N * C, N * C_half

    # --- per-chip VMEM budget, lane-padding aware -------------------------------
    try:
        vmem_cap = int(getattr(pltpu.get_tpu_info(), "vmem_capacity_bytes", 64 << 20))
    except Exception:
        vmem_cap = 64 << 20                       # conservative: v7x per-TC VMEM
    sizing_budget = min(int(vmem_cap * 0.6), 96 << 20)   # target for tile sizing
    vmem_limit = min(int(vmem_cap * 0.75), 112 << 20)    # explicit scoped-VMEM limit

    # Resident (constant-index) weight blocks; x2 for possible double buffering.
    fixed_bytes = 2 * (
        _tile_bytes(NC, NH, it_mm)          # w1bd
        + _tile_bytes(1, NH, 4)             # b1f
        + _tile_bytes(NH, N, it_mm)         # w2bd
        + _tile_bytes(N, NC, 4)             # ebc
        + _tile_bytes(NC, C_out, it_mm)     # w3st
        + _tile_bytes(1, C_out, 4)          # b3f
    )
    # Per-batch-row bytes with 128-lane padding on every intermediate.
    per_row = (
        2 * _ru(NC, 128) * it_mm            # x block, double-buffered
        + _ru(NC, 128) * 4                  # x promoted to f32 for the weighted product
        + _ru(NH, 128) * (4 + it_mm)        # h (f32) + cast for the score matmul
        + _ru(NC, 128) * (4 + it_mm)        # a_bcast (f32) + cast of weighted product
        + _ru(NC, 128) * 4                  # weighted product (f32)
        + 4 * 128 * 4                       # s / max / exp / softmax scratch
        + 2 * _ru(C_out, 128) * it_mm       # out block, double-buffered
    )

    if block_b is None:
        avail = max(sizing_budget - fixed_bytes, per_row * 8)
        bb = max(8, avail // per_row)
        if B > 8:
            # keep >= 2 grid steps so both v7x TensorCores get work and the
            # BlockSpec pipeline has something to overlap.
            bb = min(bb, _ru(-(-B // 2), 8))
        block_b = int(bb)
    block_b = max(1, min(block_b, B))
    if block_b < B:
        block_b = max(8, (block_b // 8) * 8)   # (8,128) rule on the output block

    n_blocks = -(-B // block_b)
    Bp = n_blocks * block_b
    if Bp != B:
        # zero rows produce ReLU(b3) and are sliced off below.
        x_flat = jnp.pad(x_flat, ((0, Bp - B), (0, 0)))

    grid_spec = pltpu.PrefetchScalarGridSpec(
        num_scalar_prefetch=0,
        grid=(n_blocks,),
        in_specs=[
            pl.BlockSpec((block_b, NC), lambda i: (i, 0)),     # x (lane-dense, streamed)
            pl.BlockSpec((NC, NH), lambda i: (0, 0)),          # kron(I_N, w1)   (resident)
            pl.BlockSpec((1, NH), lambda i: (0, 0)),           # tiled b1
            pl.BlockSpec((NH, N), lambda i: (0, 0)),           # kron(I_N, w2)
            pl.BlockSpec((N, NC), lambda i: (0, 0)),           # one-hot expand matrix
            pl.BlockSpec((NC, C_out), lambda i: (0, 0)),       # vstack([w3]*N)
            pl.BlockSpec((1, C_out), lambda i: (0, 0)),        # b3
        ],
        out_specs=pl.BlockSpec((block_b, C_out), lambda i: (i, 0)),
    )

    out = pl.pallas_call(
        attentive_pooling_kernel,
        out_shape=jax.ShapeDtypeStruct((Bp, C_out), x.dtype),
        grid_spec=grid_spec,
        compiler_params=pltpu.CompilerParams(
            dimension_semantics=("parallel",),     # independent batch tiles -> megacore
            vmem_limit_bytes=vmem_limit,
        ),
    )(x_flat, w1bd, b1f, w2bd, ebc, w3st, b3f)
    return out[:B]


def reference(x, w1, b1, w2, b2, w3, b3):
    """Pure-JAX reference matching the PyTorch forward (includes b2)."""
    h = jnp.maximum(x @ w1 + b1, 0.0)             # (B, N, C//2)
    s = h @ w2 + b2                               # (B, N, 1)
    a = jax.nn.softmax(s, axis=1)                 # softmax over the neighbor axis
    feats = jnp.sum(x * a, axis=1)                # (B, C)
    return jnp.maximum(feats @ w3 + b3, 0.0)      # (B, C_out)


if __name__ == "__main__":
    # Small shapes consistent with the module: batch=2, N=16 neighbors, C=32, C_out=64.
    B, N, C, C_out = 2, 16, 32, 64
    C_half = C // 2

    key = jax.random.PRNGKey(0)
    kx, k1, k2, k3, k4, k5, k6 = jax.random.split(key, 7)

    x = jax.random.normal(kx, (B, N, C), dtype=jnp.float32)
    # PyTorch Linear stores (out, in); we keep the transposed (in, out) layout.
    w1 = jax.random.normal(k1, (C, C_half), dtype=jnp.float32) * 0.1
    b1 = jax.random.normal(k2, (1, C_half), dtype=jnp.float32) * 0.1
    w2 = jax.random.normal(k3, (C_half, 1), dtype=jnp.float32) * 0.1
    b2 = jax.random.normal(k4, (1, 1), dtype=jnp.float32) * 0.1
    w3 = jax.random.normal(k5, (C, C_out), dtype=jnp.float32) * 0.1
    b3 = jax.random.normal(k6, (1, C_out), dtype=jnp.float32) * 0.1

    ref = reference(x, w1, b1, w2, b2, w3, b3)

    # f32 path (exact-division softmax; tolerance covers MXU f32-matmul pass differences).
    out = jax.block_until_ready(attentive_pooling(x, w1, b1, w2, b2, w3, b3))
    assert out.shape == (B, C_out), out.shape
    assert jnp.allclose(out, ref, atol=2e-3, rtol=2e-3), "f32 kernel mismatch vs reference"

    # bf16 activation path (review item: bf16 MXU operands + halved HBM read).
    out_bf16 = jax.block_until_ready(
        attentive_pooling(x.astype(jnp.bfloat16), w1, b1, w2, b2, w3, b3))
    assert jnp.allclose(out_bf16.astype(jnp.float32), ref, atol=5e-2, rtol=5e-2), \
        "bf16 kernel mismatch vs reference"

    print("KERNEL_OK")
</pallas_src>

<mosaic_0001>
module attributes {stable_mosaic.version = 11 : i64} {
  func.func @attentive_pooling_kernel(%arg0: i32, %arg1: memref<2x512xf32, #tpu.memory_space<vmem>>, %arg2: memref<512x256xf32, #tpu.memory_space<vmem>>, %arg3: memref<1x256xf32, #tpu.memory_space<vmem>>, %arg4: memref<256x16xf32, #tpu.memory_space<vmem>>, %arg5: memref<16x512xf32, #tpu.memory_space<vmem>>, %arg6: memref<512x64xf32, #tpu.memory_space<vmem>>, %arg7: memref<1x64xf32, #tpu.memory_space<vmem>>, %arg8: memref<2x64xf32, #tpu.memory_space<vmem>>) attributes {dimension_semantics = [#tpu.dimension_semantics<parallel>], iteration_bounds = array<i64: 1>, scalar_prefetch = 0 : i64, scratch_operands = 0 : i64, tpu.core_type = #tpu.core_type<tc>, window_params = [{transform_indices = @transform_0, window_bounds = array<i64: 2, 512>}, {pipeline_mode = #tpu.pipeline_mode<synchronous>, transform_indices = @transform_1, window_bounds = array<i64: 512, 256>}, {pipeline_mode = #tpu.pipeline_mode<synchronous>, transform_indices = @transform_2, window_bounds = array<i64: 1, 256>}, {pipeline_mode = #tpu.pipeline_mode<synchronous>, transform_indices = @transform_3, window_bounds = array<i64: 256, 16>}, {pipeline_mode = #tpu.pipeline_mode<synchronous>, transform_indices = @transform_4, window_bounds = array<i64: 16, 512>}, {pipeline_mode = #tpu.pipeline_mode<synchronous>, transform_indices = @transform_5, window_bounds = array<i64: 512, 64>}, {pipeline_mode = #tpu.pipeline_mode<synchronous>, transform_indices = @transform_6, window_bounds = array<i64: 1, 64>}, {transform_indices = @transform_7, window_bounds = array<i64: 2, 64>}]} {
    %c0 = arith.constant 0 : index
    %c0_0 = arith.constant 0 : index
    %0 = vector.load %arg1[%c0, %c0_0] : memref<2x512xf32, #tpu.memory_space<vmem>>, vector<2x512xf32>
    %c0_1 = arith.constant 0 : index
    %c0_2 = arith.constant 0 : index
    %1 = vector.load %arg2[%c0_1, %c0_2] : memref<512x256xf32, #tpu.memory_space<vmem>>, vector<512x256xf32>
    %cst = arith.constant dense<0.000000e+00> : vector<2x256xf32>
    %2 = tpu.matmul %0, %1, %cst {dimension_numbers = #tpu.dot_dimension_numbers<[1], [0], [0], [1], [0, 0, 1, 1], [], []>} : vector<2x512xf32>, vector<512x256xf32>, vector<2x256xf32> -> vector<2x256xf32>
    %c0_3 = arith.constant 0 : index
    %c0_4 = arith.constant 0 : index
    %3 = vector.load %arg3[%c0_3, %c0_4] : memref<1x256xf32, #tpu.memory_space<vmem>>, vector<1x256xf32>
    %4 = vector.broadcast %3 : vector<1x256xf32> to vector<2x256xf32>
    %5 = arith.addf %2, %4 : vector<2x256xf32>
    %cst_5 = arith.constant 0.000000e+00 : f32
    %6 = vector.broadcast %cst_5 : f32 to vector<2x256xf32>
    %7 = arith.maximumf %5, %6 : vector<2x256xf32>
    %c0_6 = arith.constant 0 : index
    %c0_7 = arith.constant 0 : index
    %8 = vector.load %arg4[%c0_6, %c0_7] : memref<256x16xf32, #tpu.memory_space<vmem>>, vector<256x16xf32>
    %cst_8 = arith.constant dense<0.000000e+00> : vector<2x16xf32>
    %9 = tpu.matmul %7, %8, %cst_8 {dimension_numbers = #tpu.dot_dimension_numbers<[1], [0], [0], [1], [0, 0, 1, 1], [], []>} : vector<2x256xf32>, vector<256x16xf32>, vector<2x16xf32> -> vector<2x16xf32>
    %cst_9 = arith.constant dense<0xFF800000> : vector<2xf32>
    %10 = vector.multi_reduction <maximumf>, %9, %cst_9 [1] : vector<2x16xf32> to vector<2xf32>
    %11 = vector.shape_cast %10 : vector<2xf32> to vector<2x1xf32>
    %12 = vector.broadcast %11 : vector<2x1xf32> to vector<2x16xf32>
    %13 = arith.subf %9, %12 : vector<2x16xf32>
    %14 = math.exp %13 : vector<2x16xf32>
    %cst_10 = arith.constant dense<0.000000e+00> : vector<2xf32>
    %15 = vector.multi_reduction <add>, %14, %cst_10 [1] : vector<2x16xf32> to vector<2xf32>
    %16 = vector.shape_cast %15 : vector<2xf32> to vector<2x1xf32>
    %17 = vector.broadcast %16 : vector<2x1xf32> to vector<2x16xf32>
    %18 = arith.divf %14, %17 : vector<2x16xf32>
    %c0_11 = arith.constant 0 : index
    %c0_12 = arith.constant 0 : index
    %19 = vector.load %arg5[%c0_11, %c0_12] : memref<16x512xf32, #tpu.memory_space<vmem>>, vector<16x512xf32>
    %cst_13 = arith.constant dense<0.000000e+00> : vector<2x512xf32>
    %20 = tpu.matmul %18, %19, %cst_13 {dimension_numbers = #tpu.dot_dimension_numbers<[1], [0], [0], [1], [0, 0, 1, 1], [], []>} : vector<2x16xf32>, vector<16x512xf32>, vector<2x512xf32> -> vector<2x512xf32>
    %21 = arith.mulf %0, %20 : vector<2x512xf32>
    %c0_14 = arith.constant 0 : index
    %c0_15 = arith.constant 0 : index
    %22 = vector.load %arg6[%c0_14, %c0_15] : memref<512x64xf32, #tpu.memory_space<vmem>>, vector<512x64xf32>
    %cst_16 = arith.constant dense<0.000000e+00> : vector<2x64xf32>
    %23 = tpu.matmul %21, %22, %cst_16 {dimension_numbers = #tpu.dot_dimension_numbers<[1], [0], [0], [1], [0, 0, 1, 1], [], []>} : vector<2x512xf32>, vector<512x64xf32>, vector<2x64xf32> -> vector<2x64xf32>
    %c0_17 = arith.constant 0 : index
    %c0_18 = arith.constant 0 : index
    %24 = vector.load %arg7[%c0_17, %c0_18] : memref<1x64xf32, #tpu.memory_space<vmem>>, vector<1x64xf32>
    %25 = vector.broadcast %24 : vector<1x64xf32> to vector<2x64xf32>
    %26 = arith.addf %23, %25 : vector<2x64xf32>
    %cst_19 = arith.constant 0.000000e+00 : f32
    %27 = vector.broadcast %cst_19 : f32 to vector<2x64xf32>
    %28 = arith.maximumf %26, %27 : vector<2x64xf32>
    %c0_20 = arith.constant 0 : index
    %c0_21 = arith.constant 0 : index
    %29 = vector.load %arg8[%c0_20, %c0_21] : memref<2x64xf32, #tpu.memory_space<vmem>>, vector<2x64xf32>
    tpu.vector_store %arg8[%c0_20, %c0_21], %28 {strides = array<i32>} : memref<2x64xf32, #tpu.memory_space<vmem>>, vector<2x64xf32>,
    return
  }
  func.func @transform_0(%arg0: i32) -> (i32, i32) {
    %c0_i32 = arith.constant 0 : i32
    %c0_i32_0 = arith.constant 0 : i32
    return %arg0, %c0_i32 : i32, i32
  }
  func.func @transform_1(%arg0: i32) -> (i32, i32) {
    %c0_i32 = arith.constant 0 : i32
    %c0_i32_0 = arith.constant 0 : i32
    %c0_i32_1 = arith.constant 0 : i32
    return %c0_i32, %c0_i32_0 : i32, i32
  }
  func.func @transform_2(%arg0: i32) -> (i32, i32) {
    %c0_i32 = arith.constant 0 : i32
    %c0_i32_0 = arith.constant 0 : i32
    %c0_i32_1 = arith.constant 0 : i32
    return %c0_i32, %c0_i32_0 : i32, i32
  }
  func.func @transform_3(%arg0: i32) -> (i32, i32) {
    %c0_i32 = arith.constant 0 : i32
    %c0_i32_0 = arith.constant 0 : i32
    %c0_i32_1 = arith.constant 0 : i32
    return %c0_i32, %c0_i32_0 : i32, i32
  }
  func.func @transform_4(%arg0: i32) -> (i32, i32) {
    %c0_i32 = arith.constant 0 : i32
    %c0_i32_0 = arith.constant 0 : i32
    %c0_i32_1 = arith.constant 0 : i32
    return %c0_i32, %c0_i32_0 : i32, i32
  }
  func.func @transform_5(%arg0: i32) -> (i32, i32) {
    %c0_i32 = arith.constant 0 : i32
    %c0_i32_0 = arith.constant 0 : i32
    %c0_i32_1 = arith.constant 0 : i32
    return %c0_i32, %c0_i32_0 : i32, i32
  }
  func.func @transform_6(%arg0: i32) -> (i32, i32) {
    %c0_i32 = arith.constant 0 : i32
    %c0_i32_0 = arith.constant 0 : i32
    %c0_i32_1 = arith.constant 0 : i32
    return %c0_i32, %c0_i32_0 : i32, i32
  }
  func.func @transform_7(%arg0: i32) -> (i32, i32) {
    %c0_i32 = arith.constant 0 : i32
    %c0_i32_0 = arith.constant 0 : i32
    return %arg0, %c0_i32 : i32, i32
  }
}

</mosaic_0001>

<bundles_post_ra>
// kernel: tpu_custom_call.1
= control target key start
LH: loop header
LB: loop body
LE: loop exit
PB: predicated region body
PF: predicated region fallthrough
CT: control target
= control target key end

     0   :  { %12 = vsyncpa [#allocation3], 0  ;;  %s2075_s0 = inlined_call_operand.vmem [shape: f32[2,512], index: 0, kind: input, shape index: {}]   ;;  %s2076_s1 = inlined_call_operand.vmem [shape: f32[512,256], index: 1, kind: input, shape index: {}]   ;;  %s2077_s2 = inlined_call_operand.vmem [shape: f32[1,256], index: 2, kind: input, shape index: {}]   ;;  %s2078_s3 = inlined_call_operand.vmem [shape: f32[256,16], index: 3, kind: input, shape index: {}]   ;;  %s2079_s4 = inlined_call_operand.hbm [shape: f32[16,512], index: 4, kind: input, shape index: {}]   ;;  %s2080_s5 = inlined_call_operand.vmem [shape: f32[512,64], index: 5, kind: input, shape index: {}]   ;;  %s2081_s6 = inlined_call_operand.vmem [shape: f32[1,64], index: 6, kind: input, shape index: {}]   ;;  %s2082_s7 = inlined_call_operand.hbm [shape: f32[2,64], index: 7, kind: output, shape index: {}]  }
   0x1   :  { %13 = vsyncpa [#allocation4], 0  ;;  %s1293_s24 = smov [#allocation2]   ;;  %s1245_s28 = scalar_lea.hbm %s2079_s4, 1024 }
   0x2   :  { %s27_s25 = sshll.u32 %s1293_s24, 4  ;;  %p1246_p0 = scmp.ne.s32.totalorder %s2079_s4, %s1245_s28  ;;  %s28_s25 = int_to_ptr.vmem [resolvable:$true] %s27_s25 }
   0x3   :  { %p1249_p1 = scmp.lt.u32.totalorder %s1245_s28, %s2079_s4 }
   0x5   :  { %p1251_p2 = pnand %p1249_p1, %p1246_p0 }
   0x7   :  { %1254 = shalt.err (!%p1251_p2)
}
   0x8   :  { %s1255_s10 = scalar_lea.vmem %s28_s25, 1024  ;;  %p1260_p4 = scmp.lt.s32.totalorder %s28_s25, %s28_s25 }
   0x9   :  { %p1256_p3 = scmp.ne.s32.totalorder %s28_s25, %s1255_s10  ;;  %p1261_p5 = scmp.lt.s32.totalorder %s1255_s10, %s1255_s10 }
   0xb   :  { %p1262_p6 = por %p1261_p5, %p1260_p4 }
   0xd   :  { %p1263_p7 = pnand %p1262_p6, %p1256_p3 }
   0xf   :  { %1266 = shalt.err (!%p1263_p7)
}
  0x10   :  { %s1294_s11 = smov 512   ;;  %s1295_s12 = smov 32  }
  0x11   :  { %33 = dma.hbm_to_vmem [thread:$0]  %s2079_s4, 1024, %s28_s25, [#allocation3], %s1294_s11, %s1294_s11, %s1295_s12  }
  0x12   :  { %1289 = dma.done.wait [#allocation3], 1024  }
  0x13   :  { %1290 = vsyncadd [#allocation3], 4294966272  ;;  %v43_v0 = vld [vmem:[%s2076_s1 + $0x8] sm:$0xff]  ;;  %v45_v1 = vld [vmem:[%s2076_s1 + $0x18] sm:$0xff]  ;;  %v172_v25 = vlaneseq  ;;  %v1296_v26 = vmov 1983009808  }
  0x14   :  { %v42_v2 = vld [vmem:[%s2076_s1] sm:$0xff]  ;;  %v998_v3 = vpack.c.bf16 %v45_v1, %v43_v0  ;;  %v44_v4 = vld [vmem:[%s2076_s1 + $0x10] sm:$0xff]  ;;  %v47_v5 = vld [vmem:[%s2076_s1 + $0x28] sm:$0xff]  ;;  %v185_v27 = vunpack.c.l.s4 %v1296_v26  ;;  %vm450_vm0 = vcmask 123904   ;;  %vm470_vm1 = vcmask 130048   ;;  %s1298_s29 = smov [#allocation5]  }
  0x15   :  { %v49_v6 = vld [vmem:[%s2076_s1 + $0x38] sm:$0xff]  ;;  %v1000_v7 = vpack.c.bf16 %v44_v4, %v42_v2  ;;  %v46_v9 = vld [vmem:[%s2076_s1 + $0x20] sm:$0xff]  ;;  %v48_v10 = vld [vmem:[%s2076_s1 + $0x30] sm:$0xff]  ;;  %v1417_v34 = vshrl.u32 %v172_v25, 7  ;;  %s881_s30 = sshll.u32 %s1298_s29, 4  ;;  %vm873_vm2 = vcmask 517120   ;;  %s882_s30 = int_to_ptr.vmem [resolvable:$true] %s881_s30 }
  0x16   :  { %v1002_v8 = vpack.c.bf16 %v49_v6, %v47_v5  ;;  %v51_v11 = vld [vmem:[%s2076_s1 + $0x48] sm:$0xff]  ;;  %999 = vmatprep.subr.bf16.mxu0 %v998_v3  ;;  %v53_v12 = vld [vmem:[%s2076_s1 + $0x58] sm:$0xff]  ;;  %v1004_v13 = vpack.c.bf16 %v48_v10, %v46_v9  ;;  %v50_v15 = vld [vmem:[%s2076_s1 + $0x40] sm:$0xff]  ;;  %v186_v35 = vunpack.c.0.s8 %v185_v27  ;;  %p1272_p9 = scmp.lt.s32.totalorder %s882_s30, %s882_s30 }
  0x17   :  { %1001 = vmatpush1.bf16.msra.mxu0 %v1000_v7  ;;  %v1006_v14 = vpack.c.bf16 %v53_v12, %v51_v11  ;;  %v52_v16 = vld [vmem:[%s2076_s1 + $0x50] sm:$0xff]  ;;  %v55_v17 = vld [vmem:[%s2076_s1 + $0x68] sm:$0xff]  ;;  %v57_v18 = vld [vmem:[%s2076_s1 + $0x78] sm:$0xff] }
  0x18   :  { %1003 = vmatprep.subr.bf16.mxu0 %v1002_v8  ;;  %v1008_v19 = vpack.c.bf16 %v52_v16, %v50_v15  ;;  %v1010_v20 = vpack.c.bf16 %v57_v18, %v55_v17  ;;  %v54_v21 = vld [vmem:[%s2076_s1 + $0x60] sm:$0xff]  ;;  %v56_v22 = vld [vmem:[%s2076_s1 + $0x70] sm:$0xff]  ;;  %v59_v23 = vld [vmem:[%s2076_s1 + $0x88] sm:$0xff]  ;;  %v1432_v42 = vsub.s32 %v186_v35, %v1417_v34 }
  0x19   :  { %v61_v24 = vld [vmem:[%s2076_s1 + $0x98] sm:$0xff]  ;;  %v1012_v28 = vpack.c.bf16 %v56_v22, %v54_v21  ;;  %v58_v30 = vld [vmem:[%s2076_s1 + $0x80] sm:$0xff]  ;;  %v60_v31 = vld [vmem:[%s2076_s1 + $0x90] sm:$0xff] }
  0x1a   :  { %v1014_v29 = vpack.c.bf16 %v61_v24, %v59_v23  ;;  %v63_v32 = vld [vmem:[%s2076_s1 + $0xa8] sm:$0xff]  ;;  %v65_v33 = vld [vmem:[%s2076_s1 + $0xb8] sm:$0xff]  ;;  %v1016_v36 = vpack.c.bf16 %v60_v31, %v58_v30  ;;  %v62_v38 = vld [vmem:[%s2076_s1 + $0xa0] sm:$0xff] }
  0x1b   :  { %1005 = vmatpush1.bf16.msra.mxu0 %v1004_v13  ;;  %v1018_v37 = vpack.c.bf16 %v65_v33, %v63_v32  ;;  %v64_v39 = vld [vmem:[%s2076_s1 + $0xb0] sm:$0xff]  ;;  %v67_v40 = vld [vmem:[%s2076_s1 + $0xc8] sm:$0xff]  ;;  %v69_v41 = vld [vmem:[%s2076_s1 + $0xd8] sm:$0xff] }
  0x1c   :  { %1007 = vmatprep.subr.bf16.mxu0 %v1006_v14  ;;  %v1020_v43 = vpack.c.bf16 %v64_v39, %v62_v38  ;;  %v1022_v44 = vpack.c.bf16 %v69_v41, %v67_v40  ;;  %v66_v45 = vld [vmem:[%s2076_s1 + $0xc0] sm:$0xff]  ;;  %v68_v46 = vld [vmem:[%s2076_s1 + $0xd0] sm:$0xff]  ;;  %v71_v48 = vld [vmem:[%s2076_s1 + $0xe8] sm:$0xff] }
  0x1d   :  { %v1443_v47 = vld [vmem:[%s2075_s0] sm:$0xff]  ;;  %v73_v49 = vld [vmem:[%s2076_s1 + $0xf8] sm:$0xff]  ;;  %v1024_v51 = vpack.c.bf16 %v68_v46, %v66_v45  ;;  %v72_v55 = vld [vmem:[%s2076_s1 + $0xf0] sm:$0xff] }
  0x1e   :  { %v1453_v50 = vrot.slane %v1443_v47, %v1432_v42  ;;  %v1026_v53 = vpack.c.bf16 %v73_v49, %v71_v48  ;;  %v70_v54 = vld [vmem:[%s2076_s1 + $0xe0] sm:$0xff]  ;;  %v75_v56 = vld [vmem:[%s2076_s1 + $0x108] sm:$0xff]  ;;  %v77_v57 = vld [vmem:[%s2076_s1 + $0x118] sm:$0xff] }
  0x1f   :  { %1009 = vmatpush1.bf16.msra.mxu0 %v1008_v19  ;;  %v1028_v58 = vpack.c.bf16 %v72_v55, %v70_v54  ;;  %v1030_v59 = vpack.c.bf16 %v77_v57, %v75_v56  ;;  %v74_v60 = vld [vmem:[%s2076_s1 + $0x100] sm:$0xff]  ;;  %v76_v61 = vld [vmem:[%s2076_s1 + $0x110] sm:$0xff]  ;;  %v79_v62 = vld [vmem:[%s2076_s1 + $0x128] sm:$0xff] }
  0x20   :  { %1011 = vmatprep.subr.bf16.mxu0 %v1010_v20  ;;  %v198_v52 = vcombine.high %v1453_v50, %v1453_v50  ;;  %v81_v63 = vld [vmem:[%s2076_s1 + $0x138] sm:$0xff]  ;;  %v1032_v0 = vpack.c.bf16 %v76_v61, %v74_v60  ;;  %v78_v2 = vld [vmem:[%s2076_s1 + $0x120] sm:$0xff]  ;;  %v80_v3 = vld [vmem:[%s2076_s1 + $0x130] sm:$0xff] }
  0x21   :  { %v1034_v1 = vpack.c.bf16 %v81_v63, %v79_v62  ;;  %v83_v4 = vld [vmem:[%s2076_s1 + $0x148] sm:$0xff]  ;;  %v85_v5 = vld [vmem:[%s2076_s1 + $0x158] sm:$0xff]  ;;  %v1036_v6 = vpack.c.bf16 %v80_v3, %v78_v2  ;;  %v82_v8 = vld [vmem:[%s2076_s1 + $0x140] sm:$0xff] }
  0x22   :  { %268 = vmatprep.mubr.f32.mxu0 %v198_v52  ;;  %v1038_v7 = vpack.c.bf16 %v85_v5, %v83_v4  ;;  %v84_v9 = vld [vmem:[%s2076_s1 + $0x150] sm:$0xff]  ;;  %v87_v10 = vld [vmem:[%s2076_s1 + $0x168] sm:$0xff]  ;;  %v89_v11 = vld [vmem:[%s2076_s1 + $0x178] sm:$0xff]  ;;  %v183_v4 = vcombine.high %v1443_v47, %v1443_v47 }
  0x23   :  { %1013 = vmatpush1.bf16.msra.mxu0 %v1012_v28  ;;  %v1040_v12 = vpack.c.bf16 %v84_v9, %v82_v8  ;;  %v1042_v13 = vpack.c.bf16 %v89_v11, %v87_v10  ;;  %v86_v14 = vld [vmem:[%s2076_s1 + $0x160] sm:$0xff]  ;;  %v88_v15 = vld [vmem:[%s2076_s1 + $0x170] sm:$0xff]  ;;  %v91_v16 = vld [vmem:[%s2076_s1 + $0x188] sm:$0xff] }
  0x24   :  { %1015 = vmatprep.subr.bf16.mxu0 %v1014_v29  ;;  %v93_v17 = vld [vmem:[%s2076_s1 + $0x198] sm:$0xff]  ;;  %v90_v18 = vld [vmem:[%s2076_s1 + $0x180] sm:$0xff]  ;;  %v92_v19 = vld [vmem:[%s2076_s1 + $0x190] sm:$0xff]  ;;  %v1044_v23 = vpack.c.bf16 %v88_v15, %v86_v14 }
  0x25   :  { %v364_v20 = vld [vmem:[%s2078_s3 + $0x80] sm:$0xff]  ;;  %v365_v21 = vld [vmem:[%s2078_s3 + $0x88] sm:$0xff]  ;;  %v366_v26 = vld [vmem:[%s2078_s3 + $0x90] sm:$0xff]  ;;  %v1046_v28 = vpack.c.bf16 %v93_v17, %v91_v16  ;;  %v1048_v39 = vpack.c.bf16 %v92_v19, %v90_v18  ;;  %v1634_v16 = vrot.slane %v183_v4, %v1432_v42 }
  0x26   :  { %v348_v22 = vld [vmem:[%s2078_s3] sm:$0xff]  ;;  %v1126_v24 = vpack.c.bf16 %v365_v21, %v364_v20  ;;  %v349_v25 = vld [vmem:[%s2078_s3 + $0x8] sm:$0xff]  ;;  %v367_v27 = vld [vmem:[%s2078_s3 + $0x98] sm:$0xff] }
  0x27   :  { %1017 = vmatpush1.bf16.msra.mxu0 %v1016_v36  ;;  %v1128_v29 = vpack.c.bf16 %v349_v25, %v348_v22  ;;  %v1130_v30 = vpack.c.bf16 %v367_v27, %v366_v26  ;;  %v350_v31 = vld [vmem:[%s2078_s3 + $0x10] sm:$0xff]  ;;  %v351_v32 = vld [vmem:[%s2078_s3 + $0x18] sm:$0xff]  ;;  %v368_v33 = vld [vmem:[%s2078_s3 + $0xa0] sm:$0xff] }
  0x28   :  { %1019 = vmatprep.subr.bf16.mxu0 %v1018_v37  ;;  %v95_v35 = vld [vmem:[%s2076_s1 + $0x1a8] sm:$0xff]  ;;  %v97_v36 = vld [vmem:[%s2076_s1 + $0x1b8] sm:$0xff]  ;;  %1127 = vmatprep.subr.bf16.mxu1 %v1126_v24  ;;  %v1132_v38 = vpack.c.bf16 %v351_v32, %v350_v31  ;;  %v94_v40 = vld [vmem:[%s2076_s1 + $0x1a0] sm:$0xff] }
  0x29   :  { %v369_v37 = vld [vmem:[%s2078_s3 + $0xa8] sm:$0xff]  ;;  %1129 = vmatpush3.bf16.msra.mxu1 %v1128_v29  ;;  %v1050_v45 = vpack.c.bf16 %v97_v36, %v95_v35  ;;  %v96_v46 = vld [vmem:[%s2076_s1 + $0x1b0] sm:$0xff]  ;;  %v371_v49 = vld [vmem:[%s2078_s3 + $0xb8] sm:$0xff]  ;;  %v199_v29 = vcombine.high %v1634_v16, %v1634_v16 }
  0x2a   :  { %1131 = vmatprep.subr.bf16.mxu1 %v1130_v30  ;;  %v1134_v41 = vpack.c.bf16 %v369_v37, %v368_v33  ;;  %v370_v48 = vld [vmem:[%s2078_s3 + $0xb0] sm:$0xff]  ;;  %v101_v52 = vld [vmem:[%s2076_s1 + $0x1d8] sm:$0xff]  ;;  %v1052_v54 = vpack.c.bf16 %v96_v46, %v94_v40  ;;  %v98_v55 = vld [vmem:[%s2076_s1 + $0x1c0] sm:$0xff] }
  0x2b   :  { %1021 = vmatpush1.bf16.msra.mxu0 %v1020_v43  ;;  %v352_v43 = vld [vmem:[%s2078_s3 + $0x20] sm:$0xff]  ;;  %v1138_v56 = vpack.c.bf16 %v371_v49, %v370_v48  ;;  %v354_v57 = vld [vmem:[%s2078_s3 + $0x30] sm:$0xff]  ;;  %v373_v62 = vld [vmem:[%s2078_s3 + $0xc8] sm:$0xff] }
  0x2c   :  { %1023 = vmatprep.subr.bf16.mxu0 %v1022_v44  ;;  %v353_v44 = vld [vmem:[%s2078_s3 + $0x28] sm:$0xff]  ;;  %v100_v60 = vld [vmem:[%s2076_s1 + $0x1d0] sm:$0xff]  ;;  %v372_v61 = vld [vmem:[%s2078_s3 + $0xc0] sm:$0xff] }
  0x2d   :  { %1133 = vmatpush3.bf16.msra.mxu1 %v1132_v38  ;;  %v103_v63 = vld [vmem:[%s2076_s1 + $0x1e8] sm:$0xff]  ;;  %v1056_v2 = vpack.c.bf16 %v100_v60, %v98_v55  ;;  %v102_v3 = vld [vmem:[%s2076_s1 + $0x1e0] sm:$0xff]  ;;  %v1142_v5 = vpack.c.bf16 %v373_v62, %v372_v61  ;;  %v104_v9 = vld [vmem:[%s2076_s1 + $0x1f0] sm:$0xff] }
  0x2e   :  { %1135 = vmatprep.subr.bf16.mxu1 %v1134_v41  ;;  %v374_v10 = vld [vmem:[%s2078_s3 + $0xd0] sm:$0xff]  ;;  %v375_v11 = vld [vmem:[%s2078_s3 + $0xd8] sm:$0xff]  ;;  %v1060_v15 = vpack.c.bf16 %v104_v9, %v102_v3  ;;  %v106_v21 = vld [vmem:[%s2076_s1 + $0x200] sm:$0xff] }
  0x2f   :  { %1025 = vmatpush1.bf16.msra.mxu0 %v1024_v51  ;;  %v99_v51 = vld [vmem:[%s2076_s1 + $0x1c8] sm:$0xff]  ;;  %v1146_v17 = vpack.c.bf16 %v375_v11, %v374_v10  ;;  %v358_v18 = vld [vmem:[%s2078_s3 + $0x50] sm:$0xff]  ;;  %v359_v19 = vld [vmem:[%s2078_s3 + $0x58] sm:$0xff] }
  0x30   :  { %1027 = vmatprep.subr.bf16.mxu0 %v1026_v53  ;;  %v1136_v53 = vpack.c.bf16 %v353_v44, %v352_v43  ;;  %v108_v22 = vld [vmem:[%s2076_s1 + $0x210] sm:$0xff]  ;;  %v113_v24 = vld [vmem:[%s2076_s1 + $0x238] sm:$0xff]  ;;  %v376_v25 = vld [vmem:[%s2078_s3 + $0xe0] sm:$0xff]  ;;  %v1148_v27 = vpack.c.bf16 %v359_v19, %v358_v18 }
  0x31   :  { %v377_v26 = vld [vmem:[%s2078_s3 + $0xe8] sm:$0xff]  ;;  %v110_v31 = vld [vmem:[%s2076_s1 + $0x220] sm:$0xff]  ;;  %v112_v32 = vld [vmem:[%s2076_s1 + $0x230] sm:$0xff] }
  0x32   :  { %1137 = vmatpush3.bf16.msra.mxu1 %v1136_v53  ;;  %v1150_v33 = vpack.c.bf16 %v377_v26, %v376_v25  ;;  %v115_v35 = vld [vmem:[%s2076_s1 + $0x248] sm:$0xff]  ;;  %v117_v36 = vld [vmem:[%s2076_s1 + $0x258] sm:$0xff]  ;;  %v1068_v37 = vpack.c.bf16 %v112_v32, %v110_v31  ;;  %v116_v40 = vld [vmem:[%s2076_s1 + $0x250] sm:$0xff] }
  0x33   :  { %1029 = vmatpush1.bf16.msra.mxu0 %v1028_v58  ;;  %v355_v58 = vld [vmem:[%s2078_s3 + $0x38] sm:$0xff]  ;;  %1139 = vmatprep.subr.bf16.mxu1 %v1138_v56  ;;  %v1070_v38 = vpack.c.bf16 %v117_v36, %v115_v35  ;;  %v119_v41 = vld [vmem:[%s2076_s1 + $0x268] sm:$0xff]  ;;  %v120_v46 = vld [vmem:[%s2076_s1 + $0x270] sm:$0xff] }
  0x34   :  { %1031 = vmatprep.subr.bf16.mxu0 %v1030_v59  ;;  %v1054_v59 = vpack.c.bf16 %v101_v52, %v99_v51  ;;  %v123_v48 = vld [vmem:[%s2076_s1 + $0x288] sm:$0xff]  ;;  %v125_v49 = vld [vmem:[%s2076_s1 + $0x298] sm:$0xff]  ;;  %v122_v53 = vld [vmem:[%s2076_s1 + $0x280] sm:$0xff] }
  0x35   :  { %v1078_v52 = vpack.c.bf16 %v125_v49, %v123_v48  ;;  %v127_v55 = vld [vmem:[%s2076_s1 + $0x2a8] sm:$0xff]  ;;  %v129_v56 = vld [vmem:[%s2076_s1 + $0x2b8] sm:$0xff]  ;;  %v128_v60 = vld [vmem:[%s2076_s1 + $0x2b0] sm:$0xff] }
  0x36   :  { %v131_v61 = vld [vmem:[%s2076_s1 + $0x2c8] sm:$0xff]  ;;  %v133_v62 = vld [vmem:[%s2076_s1 + $0x2d8] sm:$0xff]  ;;  %v146_v26 = vld [vmem:[%s2076_s1 + $0x340] sm:$0xff] }
  0x37   :  { %1033 = vmatpush1.bf16.msra.mxu0 %v1032_v0  ;;  %v105_v0 = vld [vmem:[%s2076_s1 + $0x1f8] sm:$0xff]  ;;  %v135_v3 = vld [vmem:[%s2076_s1 + $0x2e8] sm:$0xff]  ;;  %v150_v32 = vld [vmem:[%s2076_s1 + $0x360] sm:$0xff] }
  0x38   :  { %1035 = vmatprep.subr.bf16.mxu0 %v1034_v1  ;;  %v1140_v1 = vpack.c.bf16 %v355_v58, %v354_v57  ;;  %v1058_v8 = vpack.c.bf16 %v105_v0, %v103_v63  ;;  %v1082_v58 = vpack.c.bf16 %v129_v56, %v127_v55  ;;  %v1086_v0 = vpack.c.bf16 %v133_v62, %v131_v61  ;;  %v137_v4 = vld [vmem:[%s2076_s1 + $0x2f8] sm:$0xff]  ;;  %v139_v9 = vld [vmem:[%s2076_s1 + $0x308] sm:$0xff]  ;;  %v360_v62 = vld [vmem:[%s2078_s3 + $0x60] sm:$0xff] }
  0x39   :  { %v141_v10 = vld [vmem:[%s2076_s1 + $0x318] sm:$0xff]  ;;  %v155_v35 = vld [vmem:[%s2076_s1 + $0x388] sm:$0xff] }
  0x3a   :  { %1141 = vmatpush3.bf16.msra.mxu1 %v1140_v1  ;;  %v130_v1 = vld [vmem:[%s2076_s1 + $0x2c0] sm:$0xff]  ;;  %v157_v36 = vld [vmem:[%s2076_s1 + $0x398] sm:$0xff]  ;;  %v163_v48 = vld [vmem:[%s2076_s1 + $0x3c8] sm:$0xff] }
  0x3b   :  { %1037 = vmatpush1.bf16.msra.mxu0 %v1036_v6  ;;  %v356_v6 = vld [vmem:[%s2078_s3 + $0x40] sm:$0xff]  ;;  %1143 = vmatprep.subr.bf16.mxu1 %v1142_v5  ;;  %v165_v49 = vld [vmem:[%s2076_s1 + $0x3d8] sm:$0xff]  ;;  %v167_v55 = vld [vmem:[%s2076_s1 + $0x3e8] sm:$0xff] }
  0x3c   :  { %1039 = vmatprep.subr.bf16.mxu0 %v1038_v7  ;;  %v357_v7 = vld [vmem:[%s2078_s3 + $0x48] sm:$0xff]  ;;  %v169_v56 = vld [vmem:[%s2076_s1 + $0x3f8] sm:$0xff] }
  0x3d   :  { %v1144_v14 = vpack.c.bf16 %v357_v7, %v356_v6  ;;  %v1090_v6 = vpack.c.bf16 %v137_v4, %v135_v3  ;;  %v134_v7 = vld [vmem:[%s2076_s1 + $0x2e0] sm:$0xff]  ;;  %v363_v4 = vld [vmem:[%s2078_s3 + $0x78] sm:$0xff] }
  0x3f   :  { %1041 = vmatpush1.bf16.msra.mxu0 %v1040_v12  ;;  %v107_v12 = vld [vmem:[%s2076_s1 + $0x208] sm:$0xff]  ;;  %1145 = vmatpush3.bf16.msra.mxu1 %v1144_v14  ;;  %v140_v14 = vld [vmem:[%s2076_s1 + $0x310] sm:$0xff] }
  0x40   :  { %1043 = vmatprep.subr.bf16.mxu0 %v1042_v13  ;;  %v109_v13 = vld [vmem:[%s2076_s1 + $0x218] sm:$0xff]  ;;  %1147 = vmatprep.subr.bf16.mxu1 %v1146_v17 }
  0x41   :  { %v1062_v20 = vpack.c.bf16 %v109_v13, %v107_v12  ;;  %v1094_v12 = vpack.c.bf16 %v141_v10, %v139_v9  ;;  %v138_v13 = vld [vmem:[%s2076_s1 + $0x300] sm:$0xff]  ;;  %v145_v17 = vld [vmem:[%s2076_s1 + $0x338] sm:$0xff] }
  0x42   :  { %v1096_v18 = vpack.c.bf16 %v140_v14, %v138_v13 }
  0x43   :  { %1045 = vmatpush1.bf16.msra.mxu0 %v1044_v23  ;;  %v111_v23 = vld [vmem:[%s2076_s1 + $0x228] sm:$0xff]  ;;  %1149 = vmatpush3.bf16.msra.mxu1 %v1148_v27  ;;  %v148_v27 = vld [vmem:[%s2076_s1 + $0x350] sm:$0xff] }
  0x44   :  { %1047 = vmatprep.subr.bf16.mxu0 %v1046_v28  ;;  %v1064_v28 = vpack.c.bf16 %v108_v22, %v106_v21  ;;  %v1066_v30 = vpack.c.bf16 %v113_v24, %v111_v23  ;;  %1151 = vmatprep.subr.bf16.mxu1 %v1150_v33  ;;  %v144_v21 = vld [vmem:[%s2076_s1 + $0x330] sm:$0xff]  ;;  %v147_v22 = vld [vmem:[%s2076_s1 + $0x348] sm:$0xff]  ;;  %v149_v23 = vld [vmem:[%s2076_s1 + $0x358] sm:$0xff] }
  0x45   :  { %v1102_v25 = vpack.c.bf16 %v149_v23, %v147_v22  ;;  %v152_v33 = vld [vmem:[%s2076_s1 + $0x370] sm:$0xff] }
  0x47   :  { %1049 = vmatpush1.bf16.msra.mxu0 %v1048_v39  ;;  %v114_v39 = vld [vmem:[%s2076_s1 + $0x240] sm:$0xff] }
  0x48   :  { %1051 = vmatprep.subr.bf16.mxu0 %v1050_v45  ;;  %v1072_v43 = vpack.c.bf16 %v116_v40, %v114_v39  ;;  %v118_v45 = vld [vmem:[%s2076_s1 + $0x260] sm:$0xff]  ;;  %v156_v40 = vld [vmem:[%s2076_s1 + $0x390] sm:$0xff] }
  0x49   :  { %v1076_v51 = vpack.c.bf16 %v120_v46, %v118_v45  ;;  %v154_v39 = vld [vmem:[%s2076_s1 + $0x380] sm:$0xff]  ;;  %v160_v46 = vld [vmem:[%s2076_s1 + $0x3b0] sm:$0xff] }
  0x4a   :  { %v158_v45 = vld [vmem:[%s2076_s1 + $0x3a0] sm:$0xff] }
  0x4b   :  { %1053 = vmatpush1.bf16.msra.mxu0 %v1052_v54  ;;  %v124_v54 = vld [vmem:[%s2076_s1 + $0x290] sm:$0xff] }
  0x4c   :  { %1055 = vmatprep.subr.bf16.mxu0 %v1054_v59  ;;  %v1080_v57 = vpack.c.bf16 %v124_v54, %v122_v53  ;;  %v126_v59 = vld [vmem:[%s2076_s1 + $0x2a0] sm:$0xff]  ;;  %v164_v54 = vld [vmem:[%s2076_s1 + $0x3d0] sm:$0xff] }
  0x4d   :  { %v1084_v63 = vpack.c.bf16 %v128_v60, %v126_v59  ;;  %v162_v53 = vld [vmem:[%s2076_s1 + $0x3c0] sm:$0xff]  ;;  %v168_v60 = vld [vmem:[%s2076_s1 + $0x3f0] sm:$0xff] }
  0x4e   :  { %v166_v59 = vld [vmem:[%s2076_s1 + $0x3e0] sm:$0xff] }
  0x4f   :  { %1057 = vmatpush1.bf16.msra.mxu0 %v1056_v2  ;;  %v132_v2 = vld [vmem:[%s2076_s1 + $0x2d0] sm:$0xff]  ;;  %v1124_v61 = vpack.c.bf16 %v168_v60, %v166_v59  ;;  %v643_v60 = vld [vmem:[%s2080_s5 + $0x20] sm:$0xff] }
  0x50   :  { %1059 = vmatprep.subr.bf16.mxu0 %v1058_v8  ;;  %v1088_v5 = vpack.c.bf16 %v132_v2, %v130_v1  ;;  %v136_v8 = vld [vmem:[%s2076_s1 + $0x2f0] sm:$0xff]  ;;  %v379_v2 = vld [vmem:[%s2078_s3 + $0xf8] sm:$0xff] }
  0x51   :  { %v1092_v11 = vpack.c.bf16 %v136_v8, %v134_v7  ;;  %v378_v1 = vld [vmem:[%s2078_s3 + $0xf0] sm:$0xff]  ;;  %v170_v7 = vld [vmem:[%s2077_s2] sm:$0x3]  ;;  %v178_v8 = vsub.s32 1, %v1417_v34 }
  0x52   :  { %v1154_v3 = vpack.c.bf16 %v379_v2, %v378_v1  ;;  %v645_v2 = vld [vmem:[%s2080_s5 + $0x30] sm:$0xff] }
  0x53   :  { %1061 = vmatpush1.bf16.msra.mxu0 %v1060_v15  ;;  %v143_v15 = vld [vmem:[%s2076_s1 + $0x328] sm:$0xff]  ;;  %v179_v10 = vrot.slane %v170_v7, %v178_v8 }
  0x54   :  { %1063 = vmatprep.subr.bf16.mxu0 %v1062_v20  ;;  %v1098_v19 = vpack.c.bf16 %v145_v17, %v143_v15  ;;  %v142_v20 = vld [vmem:[%s2076_s1 + $0x320] sm:$0xff]  ;;  %v648_v8 = vld [vmem:[%s2080_s5 + $0x48] sm:$0xff] }
  0x55   :  { %v1100_v24 = vpack.c.bf16 %v144_v21, %v142_v20 }
  0x56   :  { %269 = vmatmul.mubr.f32.vlgmr.msra.gmra.mrb[0].mxu0 %v1453_v50  ;;  %v121_v50 = vld [vmem:[%s2076_s1 + $0x278] sm:$0xff] }
  0x57   :  { %1065 = vmatpush1.bf16.msra.mxu0 %v1064_v28  ;;  %339 = vmatprep.mubr.f32.mxu0 %v199_v29  ;;  %v1074_v44 = vpack.c.bf16 %v121_v50, %v119_v41  ;;  %v151_v28 = vld [vmem:[%s2076_s1 + $0x368] sm:$0xff]  ;;  %v153_v29 = vld [vmem:[%s2076_s1 + $0x378] sm:$0xff] }
  0x58   :  { %1067 = vmatprep.subr.bf16.mxu0 %v1066_v30  ;;  %v1104_v30 = vpack.c.bf16 %v148_v27, %v146_v26  ;;  %v1106_v31 = vpack.c.bf16 %v153_v29, %v151_v28  ;;  %v159_v41 = vld [vmem:[%s2076_s1 + $0x3a8] sm:$0xff]  ;;  %v161_v50 = vld [vmem:[%s2076_s1 + $0x3b8] sm:$0xff]  ;;  %v462_v29 = vld [vmem:[#allocation2] sm:$0xff] }
  0x59   :  { %v463_v26 = vld [vmem:[#allocation2 + $0x8] sm:$0xff] }
  0x5a   :  { %v467_v27 = vld [vmem:[#allocation2 + $0x28] sm:$0xff] }
  0x5b   :  { %1069 = vmatpush1.bf16.msra.mxu0 %v1068_v37  ;;  %v1108_v37 = vpack.c.bf16 %v152_v33, %v150_v32  ;;  %v1158_v28 = vpack.c.bf16 %v467_v27, %v463_v26  ;;  %v465_v32 = vld [vmem:[#allocation2 + $0x18] sm:$0xff] }
  0x5c   :  { %1071 = vmatprep.subr.bf16.mxu0 %v1070_v38  ;;  %v1110_v38 = vpack.c.bf16 %v157_v36, %v155_v35  ;;  %v469_v33 = vld [vmem:[#allocation2 + $0x38] sm:$0xff]  ;;  %v1297_v36 = vmov 0.0  }
  0x5d   :  { %v1162_v35 = vpack.c.bf16 %v469_v33, %v465_v32  ;;  %v654_v26 = vld [vmem:[%s2080_s5 + $0x78] sm:$0xff] }
  0x5f   :  { %1073 = vmatpush1.bf16.msra.mxu0 %v1072_v43  ;;  %v1112_v43 = vpack.c.bf16 %v156_v40, %v154_v39  ;;  %v468_v39 = vld [vmem:[#allocation2 + $0x30] sm:$0xff]  ;;  %v655_v40 = vld [vmem:[%s2080_s5 + $0x80] sm:$0xff] }
  0x60   :  { %1075 = vmatprep.subr.bf16.mxu0 %v1074_v44  ;;  %v1114_v44 = vpack.c.bf16 %v161_v50, %v159_v41  ;;  %v656_v41 = vld [vmem:[%s2080_s5 + $0x88] sm:$0xff] }
  0x63   :  { %1077 = vmatpush1.bf16.msra.mxu0 %v1076_v51  ;;  %v1116_v51 = vpack.c.bf16 %v160_v46, %v158_v45  ;;  %v1166_v45 = vpack.c.bf16 %v656_v41, %v655_v40  ;;  %v639_v46 = vld [vmem:[%s2080_s5] sm:$0xff] }
  0x64   :  { %1079 = vmatprep.subr.bf16.mxu0 %v1078_v52  ;;  %v1118_v52 = vpack.c.bf16 %v165_v49, %v163_v48  ;;  %v640_v48 = vld [vmem:[%s2080_s5 + $0x8] sm:$0xff]  ;;  %v657_v49 = vld [vmem:[%s2080_s5 + $0x90] sm:$0xff] }
  0x67   :  { %1081 = vmatpush1.bf16.msra.mxu0 %v1080_v57  ;;  %v1120_v57 = vpack.c.bf16 %v164_v54, %v162_v53  ;;  %v641_v54 = vld [vmem:[%s2080_s5 + $0x10] sm:$0xff] }
  0x68   :  { %1083 = vmatprep.subr.bf16.mxu0 %v1082_v58  ;;  %v1122_v58 = vpack.c.bf16 %v169_v56, %v167_v55  ;;  %v642_v55 = vld [vmem:[%s2080_s5 + $0x18] sm:$0xff]  ;;  %v659_v56 = vld [vmem:[%s2080_s5 + $0xa0] sm:$0xff] }
  0x6b   :  { %1085 = vmatpush1.bf16.msra.mxu0 %v1084_v63  ;;  %v361_v63 = vld [vmem:[%s2078_s3 + $0x68] sm:$0xff] }
  0x6c   :  { %1087 = vmatprep.subr.bf16.mxu0 %v1086_v0  ;;  %v1152_v0 = vpack.c.bf16 %v361_v63, %v360_v62  ;;  %v661_v62 = vld [vmem:[%s2080_s5 + $0xb0] sm:$0xff]  ;;  %v662_v63 = vld [vmem:[%s2080_s5 + $0xb8] sm:$0xff] }
  0x6d   :  { %v1178_v1 = vpack.c.bf16 %v662_v63, %v661_v62  ;;  %v694_v62 = vld [vmem:[%s2080_s5 + $0x1b8] sm:$0xff] }
  0x6e   :  { %1153 = vmatpush3.bf16.msra.mxu1 %v1152_v0 }
  0x6f   :  { %1089 = vmatpush1.bf16.msra.mxu0 %v1088_v5  ;;  %1155 = vmatprep.subr.bf16.mxu1 %v1154_v3  ;;  %v646_v3 = vld [vmem:[%s2080_s5 + $0x38] sm:$0xff] }
  0x70   :  { %1091 = vmatprep.subr.bf16.mxu0 %v1090_v6  ;;  %v174_v6 = vsub.s32 0, %v1417_v34 }
  0x72   :  { %v175_v9 = vrot.slane %v170_v7, %v174_v6  ;;  %v647_v7 = vld [vmem:[%s2080_s5 + $0x40] sm:$0xff] }
  0x73   :  { %1093 = vmatpush1.bf16.msra.mxu0 %v1092_v11 }
  0x74   :  { %1095 = vmatprep.subr.bf16.mxu0 %v1094_v12 }
  0x77   :  { %1097 = vmatpush1.bf16.msra.mxu0 %v1096_v18 }
  0x78   :  { %1099 = vmatprep.subr.bf16.mxu0 %v1098_v19 }
  0x7b   :  { %1101 = vmatpush1.bf16.msra.mxu0 %v1100_v24 }
  0x7c   :  { %1103 = vmatprep.subr.bf16.mxu0 %v1102_v25 }
  0x7f   :  { %1105 = vmatpush1.bf16.msra.mxu0 %v1104_v30  ;;  %v466_v30 = vld [vmem:[#allocation2 + $0x20] sm:$0xff] }
  0x80   :  { %1107 = vmatprep.subr.bf16.mxu0 %v1106_v31  ;;  %v1160_v31 = vpack.c.bf16 %v466_v30, %v462_v29  ;;  %v688_v29 = vld [vmem:[%s2080_s5 + $0x188] sm:$0xff] }
  0x83   :  { %1109 = vmatpush1.bf16.msra.mxu0 %v1108_v37 }
  0x84   :  { %1111 = vmatprep.subr.bf16.mxu0 %v1110_v38  ;;  %v464_v38 = vld [vmem:[#allocation2 + $0x10] sm:$0xff] }
  0x87   :  { %1113 = vmatpush1.bf16.msra.mxu0 %v1112_v43  ;;  %v1164_v43 = vpack.c.bf16 %v468_v39, %v464_v38 }
  0x88   :  { %1115 = vmatprep.subr.bf16.mxu0 %v1114_v44 }
  0x8b   :  { %1117 = vmatpush1.bf16.msra.mxu0 %v1116_v51  ;;  %v658_v51 = vld [vmem:[%s2080_s5 + $0x98] sm:$0xff] }
  0x8c   :  { %1119 = vmatprep.subr.bf16.mxu0 %v1118_v52  ;;  %v1168_v52 = vpack.c.bf16 %v640_v48, %v639_v46  ;;  %v1170_v53 = vpack.c.bf16 %v658_v51, %v657_v49  ;;  %v689_v46 = vld [vmem:[%s2080_s5 + $0x190] sm:$0xff]  ;;  %v690_v48 = vld [vmem:[%s2080_s5 + $0x198] sm:$0xff] }
  0x8f   :  { %1121 = vmatpush1.bf16.msra.mxu0 %v1120_v57  ;;  %v660_v57 = vld [vmem:[%s2080_s5 + $0xa8] sm:$0xff] }
  0x90   :  { %1123 = vmatprep.subr.bf16.mxu0 %v1122_v58  ;;  %v1172_v58 = vpack.c.bf16 %v642_v55, %v641_v54  ;;  %v1174_v59 = vpack.c.bf16 %v660_v57, %v659_v56  ;;  %v674_v54 = vld [vmem:[%s2080_s5 + $0x118] sm:$0xff]  ;;  %v691_v56 = vld [vmem:[%s2080_s5 + $0x1a0] sm:$0xff]  ;;  %v692_v57 = vld [vmem:[%s2080_s5 + $0x1a8] sm:$0xff] }
  0x93   :  { %1125 = vmatpush1.bf16.msra.mxu0 %v1124_v61  ;;  %v644_v61 = vld [vmem:[%s2080_s5 + $0x28] sm:$0xff] }
  0x94   :  { %v1176_v0 = vpack.c.bf16 %v644_v61, %v643_v60  ;;  %v676_v60 = vld [vmem:[%s2080_s5 + $0x128] sm:$0xff]  ;;  %v693_v61 = vld [vmem:[%s2080_s5 + $0x1b0] sm:$0xff] }
  0x96   :  { %340 = vmatmul.mubr.f32.vlgmr.msra.gmra.mrb[0].mxu0 %v1634_v16  ;;  %v362_v16 = vld [vmem:[%s2078_s3 + $0x70] sm:$0xff] }
  0x97   :  { %v1156_v5 = vpack.c.bf16 %v363_v4, %v362_v16  ;;  %v1180_v16 = vpack.c.bf16 %v646_v3, %v645_v2  ;;  %v663_v4 = vld [vmem:[%s2080_s5 + $0xc0] sm:$0xff]  ;;  %v678_v2 = vld [vmem:[%s2080_s5 + $0x138] sm:$0xff] }
  0x98   :  { %v695_v3 = vld [vmem:[%s2080_s5 + $0x1c0] sm:$0xff] }
  0x99   :  { %1157 = vmatpush3.bf16.msra.mxu1 %v1156_v5  ;;  %v664_v5 = vld [vmem:[%s2080_s5 + $0xc8] sm:$0xff] }
  0x9a   :  { %1159 = vmatprep.subr.bf16.mxu1 %v1158_v28  ;;  %v1182_v6 = vpack.c.bf16 %v664_v5, %v663_v4  ;;  %v687_v28 = vld [vmem:[%s2080_s5 + $0x180] sm:$0xff] }
  0x9b   :  { %v1198_v30 = vpack.c.bf16 %v688_v29, %v687_v28 }
 0x169   :  { %v341_v11 = vpop.f32.mrb[0].mxu0 }
 0x16a   :  { %v1230_v12 = vadd.f32 %v341_v11, %v175_v9  ;;  %v343_v13 = vpop.f32.mrb[1].mxu0  ;;  %v1184_v9 = vpack.c.bf16 %v648_v8, %v647_v7  ;;  %v666_v11 = vld [vmem:[%s2080_s5 + $0xd8] sm:$0xff]  ;;  %v680_v7 = vld [vmem:[%s2080_s5 + $0x148] sm:$0xff]  ;;  %v697_v8 = vld [vmem:[%s2080_s5 + $0x1d0] sm:$0xff] }
 0x16b   :  { %v1231_v14 = vadd.f32 %v343_v13, %v179_v10  ;;  %v665_v10 = vld [vmem:[%s2080_s5 + $0xd0] sm:$0xff] }
 0x16c   :  { %v346_v17 = vmax.f32 %v1230_v12, 0.0  ;;  %v1186_v12 = vpack.c.bf16 %v666_v11, %v665_v10  ;;  %v649_v13 = vld [vmem:[%s2080_s5 + $0x50] sm:$0xff] }
 0x16d   :  { %v347_v15 = vmax.f32 %v1231_v14, 0.0  ;;  %v650_v14 = vld [vmem:[%s2080_s5 + $0x58] sm:$0xff] }
 0x16f   :  { %444 = vmatprep.mubr.f32.mxu1 %v347_v15  ;;  %v1188_v15 = vpack.c.bf16 %v650_v14, %v649_v13  ;;  %v682_v13 = vld [vmem:[%s2080_s5 + $0x158] sm:$0xff]  ;;  %v699_v14 = vld [vmem:[%s2080_s5 + $0x1e0] sm:$0xff] }
 0x170   :  { %445 = vmatmul.mubr.f32.vlgmr.msra.gmra.mrb[0].mxu1 %v346_v17  ;;  %v667_v17 = vld [vmem:[%s2080_s5 + $0xe0] sm:$0xff] }
 0x171   :  { %1161 = vmatpush1.bf16.msra.mxu1 %v1160_v31  ;;  %538 = vmatprep.mubr.f32.mxu1 %v1297_v36 }
 0x172   :  { %1163 = vmatprep.subr.bf16.mxu1 %v1162_v35 }
 0x243   :  { %v925_v18 = vpop.f32.mrb[0].mxu1 }
 0x244   :  { %v926_v19 = vpop.f32.mrb[1].mxu1 }
 0x245   :  { %v927_v20 = vadd.f32 %v926_v19, %v925_v18  ;;  %v668_v18 = vld [vmem:[%s2080_s5 + $0xe8] sm:$0xff] }
 0x246   :  { %v1190_v19 = vpack.c.bf16 %v668_v18, %v667_v17 }
 0x247   :  { %v451_v21 = vsel %vm450_vm0, %v927_v20, -inf }
 0x248   :  { %452 = vmax.xlane.f32.xlu0 %v451_v21  ;;  %v652_v21 = vld [vmem:[%s2080_s5 + $0x68] sm:$0xff] }
 0x2d5   :  { %v453_v22 = vpop.xlane.xlu0 %452 }
 0x2d6   :  { %v454_v23 = vsub.f32 %v927_v20, %v453_v22  ;;  %v651_v20 = vld [vmem:[%s2080_s5 + $0x60] sm:$0xff] }
 0x2d7   :  { %v1192_v22 = vpack.c.bf16 %v652_v21, %v651_v20  ;;  %v684_v20 = vld [vmem:[%s2080_s5 + $0x168] sm:$0xff]  ;;  %v701_v21 = vld [vmem:[%s2080_s5 + $0x1f0] sm:$0xff] }
 0x2d8   :  { %v455_v24 = vmul.f32 1.442695, %v454_v23  ;;  %v669_v23 = vld [vmem:[%s2080_s5 + $0xf0] sm:$0xff] }
 0x2da   :  { %1241 = vpow2.f32 %v455_v24  ;;  %v670_v24 = vld [vmem:[%s2080_s5 + $0xf8] sm:$0xff] }
 0x2e4   :  { %v1242_v34 = vpop.eup %1241 }
 0x2e5   :  { %v457_v25 = vsel %vm450_vm0, %v1242_v34, 0.0 }
 0x2e6   :  { %458 = vadd.xlane.f32.xlu0 %v457_v25  ;;  %v653_v25 = vld [vmem:[%s2080_s5 + $0x70] sm:$0xff] }
 0x2e7   :  { %v1196_v27 = vpack.c.bf16 %v654_v26, %v653_v25  ;;  %v686_v25 = vld [vmem:[%s2080_s5 + $0x178] sm:$0xff] }
 0x373   :  { %v459_v37 = vpop.xlane.xlu0 %458 }
 0x374   :  { %1243 = vrcp.f32 %v459_v37 }
 0x37e   :  { %v1244_v50 = vpop.eup %1243 }
 0x37f   :  { %v461_v44 = vmul.f32 %v1244_v50, %v1242_v34  ;;  %v1194_v34 = vpack.c.bf16 %v670_v24, %v669_v23  ;;  %v671_v50 = vld [vmem:[%s2080_s5 + $0x100] sm:$0xff] }
 0x381   :  { %890 = vmatmul.mubr.msk.f32.vlgmr.msra.gmra.mrb[2].mxu1 %vm470_vm1, %v461_v44 }
 0x382   :  { %1165 = vmatpush1.bf16.msra.mxu1 %v1164_v43  ;;  %609 = vmatprep.mubr.f32.mxu1 %v1297_v36  ;;  %v672_v43 = vld [vmem:[%s2080_s5 + $0x108] sm:$0xff] }
 0x383   :  { %1167 = vmatprep.subr.bf16.mxu1 %v1166_v45  ;;  %v1200_v49 = vpack.c.bf16 %v672_v43, %v671_v50 }
 0x385   :  { %891 = vmatmul.mubr.msk.f32.vlgmr.msra.gmra.mrb[4].mxu1 %vm470_vm1, %v461_v44 }
 0x386   :  { %1169 = vmatpush3.bf16.msra.mxu1 %v1168_v52  ;;  %v1202_v52 = vpack.c.bf16 %v690_v48, %v689_v46 }
 0x387   :  { %1171 = vmatprep.subr.bf16.mxu1 %v1170_v53  ;;  %v673_v53 = vld [vmem:[%s2080_s5 + $0x110] sm:$0xff] }
 0x38a   :  { %1173 = vmatpush3.bf16.msra.mxu1 %v1172_v58  ;;  %v1206_v58 = vpack.c.bf16 %v692_v57, %v691_v56 }
 0x38b   :  { %1175 = vmatprep.subr.bf16.mxu1 %v1174_v59  ;;  %v675_v59 = vld [vmem:[%s2080_s5 + $0x120] sm:$0xff] }
 0x38c   :  { %v1208_v63 = vpack.c.bf16 %v676_v60, %v675_v59 }
 0x38e   :  { %1177 = vmatpush3.bf16.msra.mxu1 %v1176_v0  ;;  %v1210_v0 = vpack.c.bf16 %v694_v62, %v693_v61 }
 0x38f   :  { %1179 = vmatprep.subr.bf16.mxu1 %v1178_v1  ;;  %v677_v1 = vld [vmem:[%s2080_s5 + $0x130] sm:$0xff] }
 0x390   :  { %v1212_v4 = vpack.c.bf16 %v678_v2, %v677_v1 }
 0x392   :  { %1181 = vmatpush3.bf16.msra.mxu1 %v1180_v16  ;;  %v696_v16 = vld [vmem:[%s2080_s5 + $0x1c8] sm:$0xff] }
 0x393   :  { %1183 = vmatprep.subr.bf16.mxu1 %v1182_v6  ;;  %v1214_v5 = vpack.c.bf16 %v696_v16, %v695_v3  ;;  %v679_v6 = vld [vmem:[%s2080_s5 + $0x140] sm:$0xff] }
 0x394   :  { %v1216_v10 = vpack.c.bf16 %v680_v7, %v679_v6 }
 0x396   :  { %1185 = vmatpush3.bf16.msra.mxu1 %v1184_v9  ;;  %v698_v9 = vld [vmem:[%s2080_s5 + $0x1d8] sm:$0xff] }
 0x397   :  { %1187 = vmatprep.subr.bf16.mxu1 %v1186_v12  ;;  %v1218_v11 = vpack.c.bf16 %v698_v9, %v697_v8  ;;  %v681_v12 = vld [vmem:[%s2080_s5 + $0x150] sm:$0xff] }
 0x398   :  { %v1220_v17 = vpack.c.bf16 %v682_v13, %v681_v12 }
 0x39a   :  { %1189 = vmatpush3.bf16.msra.mxu1 %v1188_v15  ;;  %v700_v15 = vld [vmem:[%s2080_s5 + $0x1e8] sm:$0xff] }
 0x39b   :  { %1191 = vmatprep.subr.bf16.mxu1 %v1190_v19  ;;  %v1222_v18 = vpack.c.bf16 %v700_v15, %v699_v14  ;;  %v683_v19 = vld [vmem:[%s2080_s5 + $0x160] sm:$0xff] }
 0x39c   :  { %v1224_v23 = vpack.c.bf16 %v684_v20, %v683_v19 }
 0x39e   :  { %1193 = vmatpush3.bf16.msra.mxu1 %v1192_v22  ;;  %v702_v22 = vld [vmem:[%s2080_s5 + $0x1f8] sm:$0xff] }
 0x39f   :  { %1195 = vmatprep.subr.bf16.mxu1 %v1194_v34  ;;  %v1226_v24 = vpack.c.bf16 %v702_v22, %v701_v21  ;;  %v685_v34 = vld [vmem:[%s2080_s5 + $0x170] sm:$0xff]  ;;  %s1267_s5 = scalar_lea.vmem %s882_s30, 32 }
 0x3a0   :  { %v1228_v26 = vpack.c.bf16 %v686_v25, %v685_v34  ;;  %p1268_p8 = scmp.ne.s32.totalorder %s882_s30, %s1267_s5  ;;  %p1273_p10 = scmp.lt.s32.totalorder %s1267_s5, %s1267_s5 }
 0x3a2   :  { %1197 = vmatpush3.bf16.msra.mxu1 %v1196_v27  ;;  %p1274_p11 = por %p1273_p10, %p1272_p9 }
 0x3a3   :  { %1199 = vmatprep.subr.bf16.mxu1 %v1198_v30  ;;  %v892_v30 = vld [vmem:[%s2081_s6] ss:$0 sm:$0xff] }
 0x3a4   :  { %p1275_p12 = pnand %p1274_p11, %p1268_p8 }
 0x454   :  { %v540_v31 = vpop.f32.mrb[2].mxu1 }
 0x455   :  { %v542_v32 = vpop.f32.mrb[3].mxu1 }
 0x456   :  { %v620_v33 = vcombine.low %v540_v31, %v542_v32 }
 0x458   :  { %v611_v35 = vpop.f32.mrb[4].mxu1  ;;  %v628_v38 = vrot.slane %v620_v33, %v1432_v42 }
 0x459   :  { %v613_v36 = vpop.f32.mrb[5].mxu1 }
 0x45a   :  { %v621_v37 = vcombine.low %v611_v35, %v613_v36 }
 0x45c   :  { %v635_v39 = vrot.slane %v621_v37, %v1432_v42 }
 0x45e   :  { %v636_v40 = vcombine.low %v628_v38, %v635_v39 }
 0x460   :  { %v638_v41 = vmul.f32 %v636_v40, %v1443_v47 }
 0x462   :  { %v718_v44 = vrot.slane %v638_v41, %v1432_v42  ;;  %v711_v45 = vcombine.high %v638_v41, %v638_v41 }
 0x464   :  { %v726_v47 = vcombine.high %v718_v44, %v718_v44  ;;  %v725_v51 = vrot.slane %v711_v45, %v1432_v42  ;;  %v1204_v42 = vpack.c.bf16 %v674_v54, %v673_v53 }
 0x466   :  { %796 = vmatprep.mubr.f32.mxu1 %v726_v47  ;;  %v727_v55 = vcombine.high %v725_v51, %v725_v51 }
 0x467   :  { %797 = vmatmul.mubr.f32.vlgmr.msra.gmra.mrb[6].mxu1 %v718_v44 }
 0x468   :  { %1201 = vmatpush3.bf16.msra.mxu1 %v1200_v49  ;;  %866 = vmatprep.mubr.f32.mxu1 %v727_v55 }
 0x469   :  { %1203 = vmatprep.subr.bf16.mxu1 %v1202_v52 }
 0x46c   :  { %1205 = vmatpush3.bf16.msra.mxu1 %v1204_v42 }
 0x46d   :  { %1207 = vmatprep.subr.bf16.mxu1 %v1206_v58 }
 0x470   :  { %1209 = vmatpush3.bf16.msra.mxu1 %v1208_v63 }
 0x471   :  { %1211 = vmatprep.subr.bf16.mxu1 %v1210_v0 }
 0x474   :  { %1213 = vmatpush3.bf16.msra.mxu1 %v1212_v4 }
 0x475   :  { %1215 = vmatprep.subr.bf16.mxu1 %v1214_v5 }
 0x478   :  { %1217 = vmatpush3.bf16.msra.mxu1 %v1216_v10 }
 0x479   :  { %1219 = vmatprep.subr.bf16.mxu1 %v1218_v11 }
 0x47c   :  { %1221 = vmatpush3.bf16.msra.mxu1 %v1220_v17 }
 0x47d   :  { %1223 = vmatprep.subr.bf16.mxu1 %v1222_v18 }
 0x480   :  { %1225 = vmatpush3.bf16.msra.mxu1 %v1224_v23 }
 0x481   :  { %1227 = vmatprep.subr.bf16.mxu1 %v1226_v24 }
 0x484   :  { %1229 = vmatpush3.bf16.msra.mxu1 %v1228_v26 }
 0x487   :  { %867 = vmatmul.mubr.f32.vlgmr.msra.gmra.mrb[8].mxu1 %v725_v51 }
 0x53a   :  { %v960_v27 = vpop.f32.mrb[6].mxu1 }
 0x53b   :  { %v961_v28 = vpop.f32.mrb[7].mxu1 }
 0x53c   :  { %v962_v29 = vadd.f32 %v961_v28, %v960_v27 }
 0x53e   :  { %v799_v33 = vadd.f32 %v962_v29, %v892_v30 }
 0x55a   :  { %v995_v31 = vpop.f32.mrb[8].mxu1 }
 0x55b   :  { %v996_v32 = vpop.f32.mrb[9].mxu1 }
 0x55c   :  { %v997_v35 = vadd.f32 %v996_v32, %v995_v31 }
 0x55e   :  { %v869_v36 = vadd.f32 %v997_v35, %v799_v33 }
 0x560   :  { %v872_v37 = vmax.f32 %v869_v36, 0.0 }
 0x562   :  { %874 = vst.msk [vmem:[#allocation5] sm:$0x3] %vm873_vm2, %v872_v37 }
 0x563   :  { %1278 = shalt.err (!%p1275_p12)
}
 0x564   :  { %s1279_s8 = scalar_lea.hbm %s2082_s7, 32 }
 0x565   :  { %p1280_p13 = scmp.ne.s32.totalorder %s2082_s7, %s1279_s8  ;;  %p1283_p0 = scmp.lt.u32.totalorder %s1279_s8, %s2082_s7 }
 0x567   :  { %p1285_p1 = pnand %p1283_p0, %p1280_p13 }
 0x569   :  { %1288 = shalt.err (!%p1285_p1)
}
 0x56a   :  { %884 = dma.vmem_to_hbm [thread:$0]  %s882_s30, 32, %s2082_s7, [#allocation4]  }
 0x56b   :  { %1291 = dma.done.wait [#allocation4], 32  }
 0x56c   :  { %1292 = vsyncadd [#allocation4], 4294967264 }
 0x56d   :  { %888 = vsyncpa [#allocation3], 1 }
 0x56e   :  { %889 = vsyncpa [#allocation4], 1 }

</bundles_post_ra>
